<compile_context>
chip_gen: v5e
topology: v5e:2x2
jax: 0.10.0
libtpu: 0.0.40
codegen_flags: <defaults>
</compile_context>

<pallas_src>
import functools

import jax
import jax.numpy as jnp
from jax import lax
from jax.experimental import pallas as pl
from jax.experimental.pallas import tpu as pltpu

LANE = 128  # TPU lane width: pad minor matmul output dims to this.


def _round_up(n, m):
    return ((n + m - 1) // m) * m


def s_gcn_kernel(x_ref, adj_ref, w1_ref, w2_ref, slab_ref, out_ref, *,
                 nclass, n_dim, senet_hid):
    """Fused S_GCN forward (eval mode).

    out_ref lanes: [0, nclass) -> log_softmax logits, [nclass] -> senet score,
    remaining lanes -> padding (sliced off by the wrapper).
    """
    prec = lax.Precision.HIGHEST          # pinned; do not inherit global config

    x = x_ref[...]                        # (N, nfeat) -- un-padded
    adj = adj_ref[...]                    # (N, N)
    slab = slab_ref[...]                  # (3 + 2*n_dim, LANE) packed params

    # Carve the packed parameter slab with static slices (free at runtime).
    b1 = slab[0:1, :]                                              # (1, h_pad)
    b2 = slab[1:2, :]                                              # (1, c_pad)
    bs1 = slab[2:3, :senet_hid]                                    # (1, SH)
    ws1_t = slab[3:3 + n_dim, :senet_hid]                          # (n_dim, SH)
    ws2 = slab[3 + n_dim:3 + 2 * n_dim, :senet_hid]                # (n_dim, SH)
    bs2 = slab[3 + n_dim:3 + 2 * n_dim, senet_hid:senet_hid + 1]   # (n_dim, 1)

    # ---- gc1: h = relu(adj @ (x @ W1) + b1) --------------------------------
    xw1 = jnp.dot(x, w1_ref[...], preferred_element_type=jnp.float32,
                  precision=prec)                                  # (N, h_pad)
    h = jnp.dot(adj, xw1, preferred_element_type=jnp.float32,
                precision=prec) + b1
    h = jnp.maximum(h, 0.0)               # padded hidden lanes are exactly 0

    # ---- dropout ------------------------------------------------------------
    # TODO(synk): training-mode dropout (p=0.5 Bernoulli mask) not implemented.
    x1 = h

    # ---- Senet branch: VPU broadcast-mul + XLU reductions (no MXU matvecs) --
    # Relies on the invariant that padded hidden lanes of h are exactly zero
    # (zero-padded W1 columns / b1 lanes + ReLU) -- asserted in prepare_params.
    s_in = jnp.sum(h, axis=1, keepdims=True)                               # (N, 1)
    z = jnp.sum(ws1_t * s_in, axis=0, keepdims=True) + bs1                 # (1, SH)
    z = jnp.maximum(z, 0.0)
    s = jnp.sum(ws2 * z, axis=1, keepdims=True) + bs2                      # (N, 1)
    senet_score = jax.nn.sigmoid(s)
    # NOTE: as in the reference forward, h * senet_score is dead code (it is
    # overwritten by gc2(x1, adj)); the score is only exposed as an output.

    # ---- gc2 + log_softmax over the real class lanes ------------------------
    xw2 = jnp.dot(x1, w2_ref[...], preferred_element_type=jnp.float32,
                  precision=prec)                                  # (N, c_pad)
    o = jnp.dot(adj, xw2, preferred_element_type=jnp.float32,
                precision=prec) + b2
    lane = lax.broadcasted_iota(jnp.int32, o.shape, 1)
    o = jnp.where(lane < nclass, o, -1e30)          # mask padded class lanes
    m = jnp.max(o, axis=1, keepdims=True)
    shifted = o - m
    lse = jnp.log(jnp.sum(jnp.exp(shifted), axis=1, keepdims=True))
    log_probs = shifted - lse                                      # (N, c_pad)

    # Pack senet score into the lane right after the real classes -> one
    # fully dense (N, c_pad) store, no masked column stores, single output DMA.
    out_ref[...] = jnp.where(lane == nclass, senet_score, log_probs)


def prepare_params(params, nfeat, nhid, nclass, n_dim):
    """One-time packing of parameters into the kernel layout (3 arrays)."""
    senet_hid = n_dim // 3
    h_pad = _round_up(nhid, LANE)
    c_pad = _round_up(nclass + 1, LANE)   # +1 spare lane carries the senet score
    # The packed-slab layout below assumes everything fits in 128 lanes.
    assert h_pad == LANE and c_pad == LANE, "slab layout assumes nhid<=128, nclass+1<=128"
    assert senet_hid + 1 <= LANE

    # W1 stays (nfeat, h_pad): the MXU pads K<128 internally, so padding rows
    # would only inflate the DMA.  W2 is padded to (h_pad, c_pad) so its K
    # matches h's 128 lanes.  Padded W1 columns / b1 lanes MUST stay zero so
    # that relu(h) is exactly 0 in the padded hidden lanes (Senet sum relies
    # on it).
    w1 = jnp.zeros((nfeat, h_pad), jnp.float32).at[:, :nhid].set(params["w1"])
    w2 = jnp.zeros((h_pad, c_pad), jnp.float32).at[:nhid, :nclass].set(params["w2"])

    slab = jnp.zeros((3 + 2 * n_dim, LANE), jnp.float32)
    slab = slab.at[0, :nhid].set(params["b1"])                       # b1
    slab = slab.at[1, :nclass].set(params["b2"])                     # b2
    slab = slab.at[2, :senet_hid].set(params["bs1"])                 # Senet fc1 bias
    slab = slab.at[3:3 + n_dim, :senet_hid].set(params["ws1"].T)     # Ws1^T
    slab = slab.at[3 + n_dim:3 + 2 * n_dim, :senet_hid].set(params["ws2"])   # Ws2
    slab = slab.at[3 + n_dim:3 + 2 * n_dim, senet_hid].set(params["bs2"])    # bs2

    return {"w1": w1, "w2": w2, "slab": slab}


@functools.partial(jax.jit, static_argnames=("nclass", "n_dim", "senet_hid"))
def s_gcn_forward(x, adj, w1, w2, slab, *, nclass, n_dim, senet_hid):
    n, nfeat = x.shape
    h_pad = w1.shape[1]
    c_pad = w2.shape[1]

    flops = 2 * n * (nfeat * h_pad + n * h_pad + h_pad * c_pad + n * c_pad) \
        + 4 * n * senet_hid
    bytes_accessed = 4 * (x.size + adj.size + w1.size + w2.size + slab.size
                          + n * c_pad)
    cost = pl.CostEstimate(flops=int(flops),
                           transcendentals=int(n * (c_pad + 3)),
                           bytes_accessed=int(bytes_accessed))

    vmem = pl.BlockSpec(memory_space=pltpu.MemorySpace.VMEM)
    out = pl.pallas_call(
        functools.partial(s_gcn_kernel, nclass=nclass, n_dim=n_dim,
                          senet_hid=senet_hid),
        out_shape=jax.ShapeDtypeStruct((n, c_pad), jnp.float32),
        in_specs=[vmem] * 5,
        out_specs=vmem,
        cost_estimate=cost,
    )(x, adj, w1, w2, slab)

    # Single slice of lanes [0, nclass+1); split into (log_probs, score)
    # outside jit to avoid a second tiny XLA slice kernel per forward.
    return lax.slice(out, (0, 0), (n, nclass + 1))


def init_params(key, nfeat, nhid, nclass, n_dim):
    senet_hid = n_dim // 3
    ks = jax.random.split(key, 8)

    def unif(k, shape, fan):
        stdv = 1.0 / (fan ** 0.5)
        return jax.random.uniform(k, shape, jnp.float32, -stdv, stdv)

    return {
        "w1": unif(ks[0], (nfeat, nhid), nhid),             # gc1 weight
        "b1": unif(ks[1], (nhid,), nhid),                   # gc1 bias
        "w2": unif(ks[2], (nhid, nclass), nclass),          # gc2 weight
        "b2": unif(ks[3], (nclass,), nclass),               # gc2 bias
        "ws1": unif(ks[4], (senet_hid, n_dim), n_dim),      # Senet fc1 weight
        "bs1": unif(ks[5], (senet_hid,), n_dim),            # Senet fc1 bias
        "ws2": unif(ks[6], (n_dim, senet_hid), senet_hid),  # Senet fc2 weight
        "bs2": unif(ks[7], (n_dim,), senet_hid),            # Senet fc2 bias
    }


if __name__ == "__main__":
    jax.config.update("jax_default_matmul_precision", "highest")

    N = 24                       # n_dim = number of graph nodes; senet_hid = 8
    nfeat, nhid, nclass = 16, 32, 8
    senet_hid = N // 3

    key = jax.random.PRNGKey(0)
    k_x, k_adj, k_p = jax.random.split(key, 3)

    x = jax.random.normal(k_x, (N, nfeat), jnp.float32)

    # Symmetric, row-normalized dense adjacency with self-loops.
    a = jax.random.uniform(k_adj, (N, N), jnp.float32)
    a = (a + a.T) * 0.5 + jnp.eye(N, dtype=jnp.float32)
    adj = a / jnp.sum(a, axis=1, keepdims=True)

    params = init_params(k_p, nfeat, nhid, nclass, n_dim=N)
    kp = prepare_params(params, nfeat, nhid, nclass, n_dim=N)

    packed = s_gcn_forward(x, adj, kp["w1"], kp["w2"], kp["slab"],
                           nclass=nclass, n_dim=N, senet_hid=senet_hid)
    packed = jax.block_until_ready(packed)

    # Split outside jit: lanes [0, nclass) = log-probs, lane nclass = score.
    log_probs = packed[:, :nclass]
    senet_score = packed[:, nclass:nclass + 1]

    # Pure-JAX reference (eval-mode PyTorch semantics).
    h_ref = jnp.maximum(adj @ (x @ params["w1"]) + params["b1"], 0.0)
    s_in_ref = jnp.sum(h_ref, axis=1, keepdims=True).T                        # (1, N)
    z_ref = jnp.maximum(s_in_ref @ params["ws1"].T + params["bs1"], 0.0)      # (1, SH)
    score_ref = jax.nn.sigmoid(z_ref @ params["ws2"].T + params["bs2"]).T     # (N, 1)
    out_ref = jax.nn.log_softmax(adj @ (h_ref @ params["w2"]) + params["b2"], axis=1)

    assert log_probs.shape == (N, nclass) and senet_score.shape == (N, 1)
    assert bool(jnp.all(jnp.isfinite(log_probs)))
    assert bool(jnp.allclose(jnp.sum(jnp.exp(log_probs), axis=1), 1.0, atol=1e-4))
    assert bool(jnp.allclose(log_probs, out_ref, atol=1e-3, rtol=1e-3))
    assert bool(jnp.allclose(senet_score, score_ref, atol=1e-3, rtol=1e-3))

    print("KERNEL_OK")
</pallas_src>

<mosaic_0001>
module attributes {stable_mosaic.version = 11 : i64} {
  func.func @s_gcn_kernel(%arg0: memref<24x16xf32, #tpu.memory_space<vmem>>, %arg1: memref<24x24xf32, #tpu.memory_space<vmem>>, %arg2: memref<16x128xf32, #tpu.memory_space<vmem>>, %arg3: memref<128x128xf32, #tpu.memory_space<vmem>>, %arg4: memref<51x128xf32, #tpu.memory_space<vmem>>, %arg5: memref<24x128xf32, #tpu.memory_space<vmem>>) attributes {dimension_semantics = [], scalar_prefetch = 0 : i64, scratch_operands = 0 : i64, tpu.core_type = #tpu.core_type<tc>} {
    %c0 = arith.constant 0 : index
    %c0_0 = arith.constant 0 : index
    %0 = vector.load %arg0[%c0, %c0_0] : memref<24x16xf32, #tpu.memory_space<vmem>>, vector<24x16xf32>
    %c0_1 = arith.constant 0 : index
    %c0_2 = arith.constant 0 : index
    %1 = vector.load %arg1[%c0_1, %c0_2] : memref<24x24xf32, #tpu.memory_space<vmem>>, vector<24x24xf32>
    %c0_3 = arith.constant 0 : index
    %c0_4 = arith.constant 0 : index
    %2 = vector.load %arg4[%c0_3, %c0_4] : memref<51x128xf32, #tpu.memory_space<vmem>>, vector<51x128xf32>
    %3 = vector.extract_strided_slice %2 {offsets = [0, 0], sizes = [1, 128], strides = [1, 1]} : vector<51x128xf32> to vector<1x128xf32>
    %4 = vector.extract_strided_slice %2 {offsets = [1, 0], sizes = [1, 128], strides = [1, 1]} : vector<51x128xf32> to vector<1x128xf32>
    %5 = vector.extract_strided_slice %2 {offsets = [2, 0], sizes = [1, 8], strides = [1, 1]} : vector<51x128xf32> to vector<1x8xf32>
    %6 = vector.extract_strided_slice %2 {offsets = [3, 0], sizes = [24, 8], strides = [1, 1]} : vector<51x128xf32> to vector<24x8xf32>
    %7 = vector.extract_strided_slice %2 {offsets = [27, 0], sizes = [24, 8], strides = [1, 1]} : vector<51x128xf32> to vector<24x8xf32>
    %8 = vector.extract_strided_slice %2 {offsets = [27, 8], sizes = [24, 1], strides = [1, 1]} : vector<51x128xf32> to vector<24x1xf32>
    %c0_5 = arith.constant 0 : index
    %c0_6 = arith.constant 0 : index
    %9 = vector.load %arg2[%c0_5, %c0_6] : memref<16x128xf32, #tpu.memory_space<vmem>>, vector<16x128xf32>
    %cst = arith.constant dense<0.000000e+00> : vector<24x128xf32>
    %10 = tpu.matmul %0, %9, %cst {dimension_numbers = #tpu.dot_dimension_numbers<[1], [0], [0], [1], [0, 0, 1, 1], [], []>, precision = #tpu.contract_precision<fp32>} : vector<24x16xf32>, vector<16x128xf32>, vector<24x128xf32> -> vector<24x128xf32>
    %cst_7 = arith.constant dense<0.000000e+00> : vector<24x128xf32>
    %11 = tpu.matmul %1, %10, %cst_7 {dimension_numbers = #tpu.dot_dimension_numbers<[1], [0], [0], [1], [0, 0, 1, 1], [], []>, precision = #tpu.contract_precision<fp32>} : vector<24x24xf32>, vector<24x128xf32>, vector<24x128xf32> -> vector<24x128xf32>
    %12 = vector.broadcast %3 : vector<1x128xf32> to vector<24x128xf32>
    %13 = arith.addf %11, %12 : vector<24x128xf32>
    %cst_8 = arith.constant 0.000000e+00 : f32
    %14 = vector.broadcast %cst_8 : f32 to vector<24x128xf32>
    %15 = arith.maximumf %13, %14 : vector<24x128xf32>
    %cst_9 = arith.constant dense<0.000000e+00> : vector<24xf32>
    %16 = vector.multi_reduction <add>, %15, %cst_9 [1] : vector<24x128xf32> to vector<24xf32>
    %17 = vector.shape_cast %16 : vector<24xf32> to vector<24x1xf32>
    %18 = vector.broadcast %17 : vector<24x1xf32> to vector<24x8xf32>
    %19 = arith.mulf %6, %18 : vector<24x8xf32>
    %cst_10 = arith.constant dense<0.000000e+00> : vector<8xf32>
    %20 = vector.multi_reduction <add>, %19, %cst_10 [0] : vector<24x8xf32> to vector<8xf32>
    %21 = vector.shape_cast %20 : vector<8xf32> to vector<1x8xf32>
    %22 = arith.addf %21, %5 : vector<1x8xf32>
    %cst_11 = arith.constant 0.000000e+00 : f32
    %23 = vector.broadcast %cst_11 : f32 to vector<1x8xf32>
    %24 = arith.maximumf %22, %23 : vector<1x8xf32>
    %25 = vector.broadcast %24 : vector<1x8xf32> to vector<24x8xf32>
    %26 = arith.mulf %7, %25 : vector<24x8xf32>
    %cst_12 = arith.constant dense<0.000000e+00> : vector<24xf32>
    %27 = vector.multi_reduction <add>, %26, %cst_12 [1] : vector<24x8xf32> to vector<24xf32>
    %28 = vector.shape_cast %27 : vector<24xf32> to vector<24x1xf32>
    %29 = arith.addf %28, %8 : vector<24x1xf32>
    %30 = arith.negf %29 : vector<24x1xf32>
    %31 = math.exp %30 : vector<24x1xf32>
    %cst_13 = arith.constant 1.000000e+00 : f32
    %32 = vector.broadcast %cst_13 : f32 to vector<24x1xf32>
    %33 = arith.addf %32, %31 : vector<24x1xf32>
    %34 = arith.divf %32, %33 : vector<24x1xf32>
    %c0_14 = arith.constant 0 : index
    %c0_15 = arith.constant 0 : index
    %35 = vector.load %arg3[%c0_14, %c0_15] : memref<128x128xf32, #tpu.memory_space<vmem>>, vector<128x128xf32>
    %cst_16 = arith.constant dense<0.000000e+00> : vector<24x128xf32>
    %36 = tpu.matmul %15, %35, %cst_16 {dimension_numbers = #tpu.dot_dimension_numbers<[1], [0], [0], [1], [0, 0, 1, 1], [], []>, precision = #tpu.contract_precision<fp32>} : vector<24x128xf32>, vector<128x128xf32>, vector<24x128xf32> -> vector<24x128xf32>
    %cst_17 = arith.constant dense<0.000000e+00> : vector<24x128xf32>
    %37 = tpu.matmul %1, %36, %cst_17 {dimension_numbers = #tpu.dot_dimension_numbers<[1], [0], [0], [1], [0, 0, 1, 1], [], []>, precision = #tpu.contract_precision<fp32>} : vector<24x24xf32>, vector<24x128xf32>, vector<24x128xf32> -> vector<24x128xf32>
    %38 = vector.broadcast %4 : vector<1x128xf32> to vector<24x128xf32>
    %39 = arith.addf %37, %38 : vector<24x128xf32>
    %40 = tpu.iota {dimensions = array<i32: 1>} : vector<24x128xi32>
    %c8_i32 = arith.constant 8 : i32
    %41 = vector.broadcast %c8_i32 : i32 to vector<24x128xi32>
    %42 = arith.cmpi slt, %40, %41 : vector<24x128xi32>
    %cst_18 = arith.constant -1.000000e+30 : f32
    %43 = vector.broadcast %cst_18 : f32 to vector<24x128xf32>
    %44 = arith.select %42, %39, %43 : vector<24x128xi1>, vector<24x128xf32>
    %cst_19 = arith.constant dense<0xFF800000> : vector<24xf32>
    %45 = vector.multi_reduction <maximumf>, %44, %cst_19 [1] : vector<24x128xf32> to vector<24xf32>
    %46 = vector.shape_cast %45 : vector<24xf32> to vector<24x1xf32>
    %47 = vector.broadcast %46 : vector<24x1xf32> to vector<24x128xf32>
    %48 = arith.subf %44, %47 : vector<24x128xf32>
    %49 = math.exp %48 : vector<24x128xf32>
    %cst_20 = arith.constant dense<0.000000e+00> : vector<24xf32>
    %50 = vector.multi_reduction <add>, %49, %cst_20 [1] : vector<24x128xf32> to vector<24xf32>
    %51 = vector.shape_cast %50 : vector<24xf32> to vector<24x1xf32>
    %52 = math.log %51 : vector<24x1xf32>
    %53 = vector.broadcast %52 : vector<24x1xf32> to vector<24x128xf32>
    %54 = arith.subf %48, %53 : vector<24x128xf32>
    %c8_i32_21 = arith.constant 8 : i32
    %55 = vector.broadcast %c8_i32_21 : i32 to vector<24x128xi32>
    %56 = arith.cmpi eq, %40, %55 : vector<24x128xi32>
    %57 = vector.shape_cast %34 : vector<24x1xf32> to vector<24x1xf32>
    %58 = vector.broadcast %57 : vector<24x1xf32> to vector<24x128xf32>
    %59 = arith.select %56, %58, %54 : vector<24x128xi1>, vector<24x128xf32>
    %c0_22 = arith.constant 0 : index
    %c0_23 = arith.constant 0 : index
    %60 = vector.load %arg5[%c0_22, %c0_23] : memref<24x128xf32, #tpu.memory_space<vmem>>, vector<24x128xf32>
    tpu.vector_store %arg5[%c0_22, %c0_23], %59 {strides = array<i32>} : memref<24x128xf32, #tpu.memory_space<vmem>>, vector<24x128xf32>,
    return
  }
}

</mosaic_0001>

<bundles_post_ra>
// kernel: s_gcn_forward.1
= control target key start
LH: loop header
LB: loop body
LE: loop exit
PB: predicated region body
PF: predicated region fallthrough
CT: control target
= control target key end

     0   :  { %10 = vsyncpa [#allocation3], 0  ;;  %s1961_s0 = inlined_call_operand.vmem [shape: f32[24,16], index: 0, kind: input, shape index: {}]   ;;  %s1962_s1 = inlined_call_operand.vmem [shape: f32[24,24], index: 1, kind: input, shape index: {}]   ;;  %s1963_s2 = inlined_call_operand.vmem [shape: f32[16,128], index: 2, kind: input, shape index: {}]   ;;  %s1964_s3 = inlined_call_operand.hbm [shape: f32[128,128], index: 3, kind: input, shape index: {}]   ;;  %s1965_s4 = inlined_call_operand.hbm [shape: f32[51,128], index: 4, kind: input, shape index: {}]   ;;  %s1966_s5 = inlined_call_operand.vmem [shape: f32[24,128], index: 5, kind: output, shape index: {}]  }
   0x1   :  { %s22_s20 = sshll.u32 %s1964_s3, 4  ;;  %s23_s20 = int_to_ptr.hbm [resolvable:$true] %s22_s20 }
   0x2   :  { %11 = vsyncpa [#allocation5], 0  ;;  %s1526_s21 = smov [#allocation2]   ;;  %s35_s25 = sshll.u32 %s1965_s4, 4  ;;  %s36_s25 = int_to_ptr.hbm [resolvable:$true] %s35_s25 }
   0x3   :  { %s24_s22 = sshll.u32 %s1526_s21, 4  ;;  %s1527_s26 = smov 128   ;;  %s25_s22 = int_to_ptr.vmem [resolvable:$true] %s24_s22 }
   0x4   :  { %s1528_s27 = smov 8   ;;  %s1529_s28 = smov [#allocation4]  }
   0x5   :  { %30 = dma.hbm_to_vmem [thread:$0]  %s23_s20, 2048, %s25_s22, [#allocation3], %s1527_s26, %s1527_s26, %s1528_s27  }
   0x6   :  { %s37_s29 = sshll.u32 %s1529_s28, 4  ;;  %s38_s29 = int_to_ptr.vmem [resolvable:$true] %s37_s29 }
   0x7   :  { %43 = dma.hbm_to_vmem [thread:$0]  %s36_s25, 896, %s38_s29, [#allocation5], %s1527_s26, %s1527_s26, %s1528_s27  }
   0x8   :  { %1522 = dma.done.wait [#allocation3], 2048  }
   0x9   :  { %1523 = vsyncadd [#allocation3], 4294965248 }
   0xa   :  { %1524 = dma.done.wait [#allocation5], 896  }
   0xb   :  { %1525 = vsyncadd [#allocation5], 4294966400  ;;  %vm67_vm0 = vcmask 130048   ;;  %v66_v0 = vld [vmem:[%s1963_s2 + $0x8] sm:$0xff]  ;;  %v65_v1 = vld [vmem:[%s1963_s2] sm:$0xff]  ;;  %vm299_vm1 = vcmask 195584  }
   0xc   :  { %v52_v2 = vld [vmem:[%s1961_s0] sm:$0xff]  ;;  %v91_v3 = vand.u32 4294901760, %v66_v0  ;;  %v93_v4 = vand.u32 4294901760, %v65_v1  ;;  %v53_v6 = vld [vmem:[%s1961_s0 + $0x8] sm:$0xff]  ;;  %v54_v9 = vld [vmem:[%s1961_s0 + $0x10] sm:$0xff]  ;;  %vm555_vm2 = vcmask 1042432  }
   0xd   :  { %v69_v5 = vsel %vm67_vm0, %v52_v2, 0  ;;  %v72_v8 = vsel %vm67_vm0, %v53_v6, 0  ;;  %v75_v17 = vsel %vm67_vm0, %v54_v9, 0  ;;  %v55_v47 = vld [vmem:[%s1962_s1] sm:$0xff]  ;;  %v56_v60 = vld [vmem:[%s1962_s1 + $0x8] sm:$0xff]  ;;  %vm573_vm3 = vcmask 1044480  }
   0xe   :  { %v95_v7 = vand.u32 4294901760, %v69_v5  ;;  %v135_v10 = vsub.f32 %v66_v0, %v91_v3  ;;  %92 = vmatpush.msra.mxu0 %v91_v3  ;;  %v141_v11 = vsub.f32 %v65_v1, %v93_v4  ;;  %210 = vmatpush.msra.mxu3 %v91_v3  ;;  %v103_v12 = vand.u32 4294901760, %v72_v8 }
   0xf   :  { %v111_v23 = vand.u32 4294901760, %v75_v17  ;;  %v301_v50 = vsel %vm299_vm1, %v55_v47, 0  ;;  %v304_v2 = vsel %vm299_vm1, %v56_v60, 0  ;;  %v709_v47 = vld [vmem:[#allocation2 + $0x60] sm:$0xff]  ;;  %vm584_vm4 = vcmask 64512  }
  0x10   :  { %v96_v13 = vsub.f32 %v69_v5, %v95_v7  ;;  %175 = vmatpush.msra.mxu2 %v135_v10  ;;  %94 = vmatpush.msra.mxu0 %v93_v4  ;;  %v136_v14 = vand.u32 4294901760, %v135_v10  ;;  %v142_v15 = vand.u32 4294901760, %v141_v11  ;;  %v104_v16 = vsub.f32 %v72_v8, %v103_v12 }
  0x11   :  { %212 = vmatpush.msra.mxu3 %v93_v4  ;;  %v112_v28 = vsub.f32 %v75_v17, %v111_v23  ;;  %v1589_v56 = vand.u32 4294901760, %v301_v50  ;;  %vm613_vm5 = vcmask 59392   ;;  %vm603_vm6 = vcmask 64515  }
  0x12   :  { %v97_v18 = vand.u32 4294901760, %v96_v13  ;;  %178 = vmatpush.msra.mxu2 %v141_v11  ;;  %v137_v19 = vsub.f32 %v135_v10, %v136_v14  ;;  %v143_v20 = vsub.f32 %v141_v11, %v142_v15  ;;  %249 = vmatpush.msrb.mxu0 %v136_v14  ;;  %v105_v22 = vand.u32 4294901760, %v104_v16  ;;  %v57_v11 = vld [vmem:[%s1962_s1 + $0x10] sm:$0xff] }
  0x13   :  { %181 = vmatmul.f32.vlgmr.msra.gmra.mxu2 %v96_v13  ;;  %v113_v30 = vand.u32 4294901760, %v112_v28  ;;  %v1595_v0 = vsub.f32 %v301_v50, %v1589_v56 }
  0x14   :  { %v98_v21 = vsub.f32 %v96_v13, %v97_v18  ;;  %216 = vmatmul.f32.vlgmr.msra.gmra.mxu3 %v97_v18  ;;  %v138_v24 = vand.u32 4294901760, %v137_v19  ;;  %v144_v25 = vand.u32 4294901760, %v143_v20  ;;  %253 = vmatpush.msrb.mxu0 %v142_v15  ;;  %v106_v27 = vsub.f32 %v104_v16, %v105_v22 }
  0x15   :  { %v114_v31 = vsub.f32 %v112_v28, %v113_v30  ;;  %v1599_v6 = vand.u32 4294901760, %v1595_v0  ;;  %v307_v18 = vsel %vm299_vm1, %v57_v11, 0 }
  0x16   :  { %v99_v26 = vand.u32 4294901760, %v98_v21  ;;  %139 = vmatpush.msra.mxu1 %v138_v24  ;;  %v107_v29 = vand.u32 4294901760, %v106_v27 }
  0x17   :  { %v115_v32 = vand.u32 4294901760, %v114_v31  ;;  %v331_v14 = vsub.f32 %v1595_v0, %v1599_v6 }
  0x18   :  { %100 = vmatmul.f32.vlgmr.msra.gmra.mxu0 %v99_v26  ;;  %145 = vmatpush.msra.mxu1 %v144_v25 }
  0x19   :  { %147 = vmatmul.f32.vlgmr.msra.gmra.mxu1 %v95_v7  ;;  %v1612_v21 = vand.u32 4294901760, %v331_v14 }
  0x1a   :  { %282 = vmatpush.msrb.mxu1 %v91_v3 }
  0x1b   :  { %186 = vmatmul.f32.gmra.mxu2 %v104_v16 }
  0x1c   :  { %222 = vmatmul.f32.gmra.mxu3 %v105_v22  ;;  %284 = vmatpush.msrb.mxu1 %v93_v4 }
  0x20   :  { %108 = vmatmul.f32.gmra.mxu0 %v107_v29 }
  0x21   :  { %151 = vmatmul.f32.gmra.mxu1 %v103_v12 }
  0x23   :  { %191 = vmatmul.f32.gmra.mxu2 %v112_v28 }
  0x24   :  { %228 = vmatmul.f32.gmra.mxu3 %v113_v30 }
  0x28   :  { %116 = vmatmul.f32.gmra.mxu0 %v115_v32 }
  0x29   :  { %155 = vmatmul.f32.gmra.mxu1 %v111_v23 }
  0x30   :  { %255 = vmatmul.f32.vlgmr.msrb.gmra.mxu0 %v95_v7 }
  0x31   :  { %286 = vmatmul.f32.vlgmr.msrb.gmra.mxu1 %v95_v7  ;;  %v1601_v7 = vand.u32 4294901760, %v304_v2 }
  0x33   :  { %v1609_v15 = vsub.f32 %v304_v2, %v1601_v7  ;;  %v706_v2 = vld [vmem:[#allocation2 + $0x48] sm:$0xff] }
  0x35   :  { %v1615_v22 = vand.u32 4294901760, %v1609_v15 }
  0x37   :  { %v339_v28 = vsub.f32 %v1609_v15, %v1615_v22 }
  0x38   :  { %259 = vmatmul.f32.gmra.mxu0 %v103_v12 }
  0x39   :  { %290 = vmatmul.f32.gmra.mxu1 %v103_v12 }
  0x40   :  { %263 = vmatmul.f32.gmra.mxu0 %v111_v23 }
  0x41   :  { %294 = vmatmul.f32.gmra.mxu1 %v111_v23  ;;  %v1617_v23 = vand.u32 4294901760, %v307_v18 }
  0x43   :  { %v1623_v29 = vsub.f32 %v307_v18, %v1617_v23 }
  0x95   :  { %v101_v33 = vpop.f32.mrf.mxu0 }
  0x96   :  { %v148_v34 = vpop.f32.mrf.mxu1  ;;  %v182_v37 = vpop.f32.mrf.mxu2 }
  0x97   :  { %v217_v38 = vpop.f32.mrf.mxu3  ;;  %v149_v42 = vadd.f32 %v148_v34, %v101_v33  ;;  %v1627_v33 = vand.u32 4294901760, %v339_v28  ;;  %v1630_v34 = vand.u32 4294901760, %v1623_v29 }
  0x99   :  { %v183_v48 = vadd.f32 %v182_v37, %v149_v42 }
  0x9b   :  { %v218_v51 = vadd.f32 %v217_v38, %v183_v48  ;;  %v712_v38 = vld [vmem:[#allocation2 + $0x78] sm:$0xff] }
  0x9d   :  { %v109_v35 = vpop.f32.mrf.mxu0 }
  0x9e   :  { %v152_v36 = vpop.f32.mrf.mxu1  ;;  %v187_v41 = vpop.f32.mrf.mxu2 }
  0x9f   :  { %v153_v43 = vadd.f32 %v152_v36, %v109_v35  ;;  %v223_v45 = vpop.f32.mrf.mxu3  ;;  %v347_v36 = vsub.f32 %v1623_v29, %v1630_v34 }
  0xa1   :  { %v188_v49 = vadd.f32 %v187_v41, %v153_v43  ;;  %v1638_v37 = vand.u32 4294901760, %v347_v36  ;;  %v710_v43 = vld [vmem:[#allocation2 + $0x68] sm:$0xff] }
  0xa3   :  { %v224_v52 = vadd.f32 %v223_v45, %v188_v49 }
  0xa5   :  { %v117_v39 = vpop.f32.mrf.mxu0 }
  0xa6   :  { %v156_v40 = vpop.f32.mrf.mxu1  ;;  %v192_v54 = vpop.f32.mrf.mxu2 }
  0xa7   :  { %v157_v53 = vadd.f32 %v156_v40, %v117_v39  ;;  %v229_v63 = vpop.f32.mrf.mxu3  ;;  %v1651_v39 = vand.u32 4294901760, %v712_v38  ;;  %v711_v40 = vld [vmem:[#allocation2 + $0x70] sm:$0xff] }
  0xa8   :  { %v1656_v42 = vand.u32 4294901760, %v711_v40 }
  0xa9   :  { %v193_v61 = vadd.f32 %v192_v54, %v157_v53  ;;  %v1654_v41 = vsub.f32 %v712_v38, %v1651_v39 }
  0xaa   :  { %v1662_v45 = vsub.f32 %v711_v40, %v1656_v42 }
  0xab   :  { %v230_v3 = vadd.f32 %v229_v63, %v193_v61 }
  0xac   :  { %v778_v49 = vand.u32 4294901760, %v1662_v45 }
  0xad   :  { %v256_v44 = vpop.f32.mrf.mxu0 }
  0xae   :  { %v287_v46 = vpop.f32.mrf.mxu1  ;;  %v257_v57 = vadd.f32 %v256_v44, %v218_v51  ;;  %v772_v44 = vand.u32 4294901760, %v1654_v41  ;;  %v1676_v51 = vand.u32 4294901760, %v709_v47  ;;  %v779_v54 = vsub.f32 %v1662_v45, %v778_v49 }
  0xb0   :  { %v288_v1 = vadd.f32 %v287_v46, %v257_v57  ;;  %v1664_v46 = vand.u32 4294901760, %v710_v43  ;;  %v773_v48 = vsub.f32 %v1654_v41, %v772_v44  ;;  %v1686_v57 = vsub.f32 %v709_v47, %v1676_v51 }
  0xb1   :  { %v780_v60 = vand.u32 4294901760, %v779_v54 }
  0xb2   :  { %v326_v8 = vand.u32 4294901760, %v288_v1  ;;  %v1674_v50 = vsub.f32 %v710_v43, %v1664_v46  ;;  %v774_v53 = vand.u32 4294901760, %v773_v48  ;;  %v701_v48 = vld [vmem:[#allocation2 + $0x20] sm:$0xff] }
  0xb4   :  { %v379_v16 = vsub.f32 %v288_v1, %v326_v8 }
  0xb5   :  { %v260_v55 = vpop.f32.mrf.mxu0 }
  0xb6   :  { %v261_v58 = vadd.f32 %v260_v55, %v224_v52  ;;  %v291_v59 = vpop.f32.mrf.mxu1  ;;  %v380_v25 = vand.u32 4294901760, %v379_v16  ;;  %v708_v52 = vld [vmem:[#allocation2 + $0x58] sm:$0xff]  ;;  %v784_v55 = vand.u32 4294901760, %v1674_v50 }
  0xb8   :  { %v292_v62 = vadd.f32 %v291_v59, %v261_v58  ;;  %v381_v31 = vsub.f32 %v379_v16, %v380_v25  ;;  %v1690_v58 = vand.u32 4294901760, %v708_v52  ;;  %v707_v59 = vld [vmem:[#allocation2 + $0x50] sm:$0xff]  ;;  %v785_v61 = vsub.f32 %v1674_v50, %v784_v55 }
  0xb9   :  { %v1697_v63 = vand.u32 4294901760, %v707_v59 }
  0xba   :  { %v324_v4 = vand.u32 4294901760, %v292_v62  ;;  %v382_v35 = vand.u32 4294901760, %v381_v31  ;;  %v1701_v1 = vsub.f32 %v708_v52, %v1690_v58 }
  0xbc   :  { %v373_v12 = vsub.f32 %v292_v62, %v324_v4  ;;  %v790_v62 = vand.u32 4294901760, %v1686_v57 }
  0xbd   :  { %v264_v5 = vpop.f32.mrf.mxu0 }
  0xbe   :  { %v265_v9 = vadd.f32 %v264_v5, %v230_v3  ;;  %v295_v10 = vpop.f32.mrf.mxu1  ;;  %v374_v20 = vand.u32 4294901760, %v373_v12  ;;  %v786_v3 = vand.u32 4294901760, %v785_v61  ;;  %v1709_v5 = vsub.f32 %v707_v59, %v1697_v63  ;;  %v700_v61 = vld [vmem:[#allocation2 + $0x18] sm:$0xff] }
  0xbf   :  { %v1769_v59 = vand.u32 4294901760, %v701_v48 }
  0xc0   :  { %v296_v13 = vadd.f32 %v295_v10, %v265_v9  ;;  %v375_v27 = vsub.f32 %v373_v12, %v374_v20  ;;  %v796_v9 = vand.u32 4294901760, %v1701_v1  ;;  %v705_v10 = vld [vmem:[#allocation2 + $0x40] sm:$0xff] }
  0xc1   :  { %v1720_v14 = vand.u32 4294901760, %v705_v10 }
  0xc2   :  { %v322_v17 = vand.u32 4294901760, %v296_v13  ;;  %v376_v32 = vand.u32 4294901760, %v375_v27 }
  0xc4   :  { %v367_v19 = vsub.f32 %v296_v13, %v322_v17  ;;  %323 = vmatpush.msrb.mxu2 %v322_v17  ;;  %449 = vmatpush.msra.mxu1 %v322_v17 }
  0xc6   :  { %v368_v24 = vand.u32 4294901760, %v367_v19  ;;  %325 = vmatpush.msrb.mxu2 %v324_v4  ;;  %412 = vmatpush.msra.mxu0 %v367_v19 }
  0xc7   :  { %451 = vmatpush.msra.mxu1 %v324_v4 }
  0xc8   :  { %327 = vmatpush.msrb.mxu2 %v326_v8  ;;  %415 = vmatpush.msra.mxu0 %v373_v12  ;;  %v369_v26 = vsub.f32 %v367_v19, %v368_v24  ;;  %v802_v12 = vand.u32 4294901760, %v1709_v5 }
  0xc9   :  { %453 = vmatpush.msra.mxu1 %v326_v8  ;;  %333 = vmatmul.f32.vlgmr.msrb.gmra.mxu2 %v1612_v21 }
  0xca   :  { %489 = vmatpush.msra.mxu2 %v368_v24  ;;  %418 = vmatpush.msra.mxu0 %v379_v16  ;;  %v370_v30 = vand.u32 4294901760, %v369_v26  ;;  %v797_v16 = vsub.f32 %v1701_v1, %v796_v9  ;;  %v803_v18 = vsub.f32 %v1709_v5, %v802_v12  ;;  %v703_v26 = vld [vmem:[#allocation2 + $0x30] sm:$0xff] }
  0xcb   :  { %421 = vmatmul.f32.vlgmr.msra.gmra.mxu0 %v1595_v0  ;;  %457 = vmatmul.f32.vlgmr.msra.gmra.mxu1 %v1599_v6 }
  0xcc   :  { %493 = vmatpush.msra.mxu2 %v374_v20  ;;  %371 = vmatpush.msrb.mxu3 %v370_v30  ;;  %v1733_v20 = vsub.f32 %v705_v10, %v1720_v14  ;;  %v804_v27 = vand.u32 4294901760, %v803_v18  ;;  %v1779_v10 = vand.u32 4294901760, %v700_v61 }
  0xcd   :  { %714 = vmatpush.msrb.mxu0 %v1651_v39  ;;  %775 = vmatpush.msrb.mxu1 %v774_v53 }
  0xce   :  { %497 = vmatpush.msra.mxu2 %v380_v25  ;;  %377 = vmatpush.msrb.mxu3 %v376_v32  ;;  %v798_v25 = vand.u32 4294901760, %v797_v16  ;;  %v814_v30 = vand.u32 4294901760, %v1733_v20  ;;  %v1748_v32 = vand.u32 4294901760, %v703_v26  ;;  %v699_v16 = vld [vmem:[#allocation2 + $0x10] sm:$0xff] }
  0xcf   :  { %716 = vmatpush.msrb.mxu0 %v1656_v42  ;;  %781 = vmatpush.msrb.mxu1 %v780_v60 }
  0xd0   :  { %383 = vmatpush.msrb.mxu3 %v382_v35  ;;  %881 = vmatpush.msrb.mxu2 %v1654_v41  ;;  %v702_v35 = vld [vmem:[#allocation2 + $0x28] sm:$0xff]  ;;  %v815_v38 = vsub.f32 %v1733_v20, %v814_v30  ;;  %v1760_v47 = vsub.f32 %v703_v26, %v1748_v32  ;;  %v1794_v26 = vand.u32 4294901760, %v699_v16 }
  0xd1   :  { %341 = vmatmul.f32.gmra.mxu2 %v1627_v33  ;;  %385 = vmatmul.f32.vlgmr.msrb.gmra.mxu3 %v1589_v56  ;;  %v1755_v43 = vand.u32 4294901760, %v702_v35 }
  0xd2   :  { %525 = vmatpush.msra.mxu3 %v322_v17  ;;  %884 = vmatpush.msrb.mxu2 %v1662_v45  ;;  %v704_v17 = vld [vmem:[#allocation2 + $0x38] sm:$0xff]  ;;  %v816_v52 = vand.u32 4294901760, %v815_v38  ;;  %v1970_v60 = vand.u32 4294901760, %v1760_v47  ;;  %v1971_v45 = vand.u32 4294901760, %v1760_v47 }
  0xd3   :  { %426 = vmatmul.f32.gmra.mxu0 %v1609_v15  ;;  %463 = vmatmul.f32.gmra.mxu1 %v1615_v22  ;;  %v1735_v24 = vand.u32 4294901760, %v704_v17  ;;  %v1767_v54 = vsub.f32 %v702_v35, %v1755_v43 }
  0xd4   :  { %527 = vmatpush.msra.mxu3 %v324_v4  ;;  %718 = vmatpush.msrb.mxu0 %v1664_v46  ;;  %v791_v4 = vsub.f32 %v1686_v57, %v790_v62 }
  0xd5   :  { %887 = vmatpush.msrb.mxu2 %v1674_v50  ;;  %787 = vmatpush.msrb.mxu1 %v786_v3  ;;  %v1745_v31 = vsub.f32 %v704_v17, %v1735_v24  ;;  %v1969_v3 = vand.u32 4294901760, %v1767_v54  ;;  %v1972_v50 = vand.u32 4294901760, %v1767_v54 }
  0xd6   :  { %529 = vmatpush.msra.mxu3 %v326_v8  ;;  %720 = vmatpush.msrb.mxu0 %v1676_v51  ;;  %v1711_v8 = vand.u32 4294901760, %v706_v2  ;;  %v792_v11 = vand.u32 4294901760, %v791_v4  ;;  %v1777_v4 = vsub.f32 %v701_v48, %v1769_v59  ;;  %v1804_v48 = vsub.f32 %v699_v16, %v1794_v26 }
  0xd7   :  { %890 = vmatpush.msrb.mxu2 %v1686_v57  ;;  %v820_v40 = vand.u32 4294901760, %v1745_v31  ;;  %v833_v17 = vsub.f32 %v1767_v54, %v1969_v3 }
  0xd8   :  { %944 = vmatpush.msrb.mxu3 %v1651_v39  ;;  %722 = vmatpush.msrb.mxu0 %v1690_v58  ;;  %v1718_v13 = vsub.f32 %v706_v2, %v1711_v8  ;;  %v1967_v18 = vand.u32 4294901760, %v1777_v4  ;;  %v1973_v57 = vand.u32 4294901760, %v1777_v4 }
  0xd9   :  { %349 = vmatmul.f32.gmra.mxu2 %v1638_v37  ;;  %389 = vmatmul.f32.gmra.mxu3 %v1601_v7  ;;  %v821_v53 = vsub.f32 %v1745_v31, %v820_v40  ;;  %v834_v35 = vand.u32 4294901760, %v833_v17 }
  0xda   :  { %946 = vmatpush.msrb.mxu3 %v1656_v42  ;;  %893 = vmatpush.msrb.mxu2 %v1701_v1  ;;  %v808_v19 = vand.u32 4294901760, %v1718_v13 }
  0xdb   :  { %431 = vmatmul.f32.gmra.mxu0 %v1623_v29  ;;  %469 = vmatmul.f32.gmra.mxu1 %v1630_v34  ;;  %v822_v2 = vand.u32 4294901760, %v821_v53  ;;  %v697_v53 = vld [vmem:[#allocation2] sm:$0xff] }
  0xdc   :  { %948 = vmatpush.msrb.mxu3 %v1664_v46  ;;  %724 = vmatpush.msrb.mxu0 %v1697_v63  ;;  %v809_v28 = vsub.f32 %v1718_v13, %v808_v19  ;;  %v1815_v17 = vand.u32 4294901760, %v697_v53 }
  0xdd   :  { %896 = vmatpush.msrb.mxu2 %v1709_v5  ;;  %793 = vmatpush.msrb.mxu1 %v792_v11  ;;  %v827_v11 = vsub.f32 %v1760_v47, %v1970_v60 }
  0xde   :  { %950 = vmatpush.msrb.mxu3 %v1676_v51  ;;  %726 = vmatpush.msrb.mxu0 %v1711_v8  ;;  %v810_v36 = vand.u32 4294901760, %v809_v28  ;;  %v698_v28 = vld [vmem:[#allocation2 + $0x8] sm:$0xff] }
  0xdf   :  { %899 = vmatpush.msrb.mxu2 %v1718_v13  ;;  %799 = vmatpush.msrb.mxu1 %v798_v25  ;;  %v1792_v25 = vsub.f32 %v700_v61, %v1779_v10 }
  0xe0   :  { %952 = vmatpush.msrb.mxu3 %v1690_v58  ;;  %728 = vmatpush.msrb.mxu0 %v1720_v14 }
  0xe1   :  { %393 = vmatmul.f32.gmra.mxu3 %v1617_v23  ;;  %499 = vmatmul.f32.vlgmr.msra.gmra.mxu2 %v1589_v56  ;;  %v1968_v38 = vand.u32 4294901760, %v1792_v25 }
  0xe2   :  { %954 = vmatpush.msrb.mxu3 %v1697_v63  ;;  %902 = vmatpush.msrb.mxu2 %v1733_v20 }
  0xe3   :  { %730 = vmatpush.msrb.mxu0 %v1735_v24  ;;  %805 = vmatpush.msrb.mxu1 %v804_v27  ;;  %v828_v27 = vand.u32 4294901760, %v827_v11  ;;  %v850_v11 = vand.u32 4294901760, %v1804_v48 }
  0xe4   :  { %956 = vmatpush.msrb.mxu3 %v1711_v8  ;;  %905 = vmatpush.msrb.mxu2 %v1745_v31 }
  0xe5   :  { %732 = vmatpush.msrb.mxu0 %v1748_v32  ;;  %811 = vmatpush.msrb.mxu1 %v810_v36  ;;  %v839_v36 = vsub.f32 %v1777_v4, %v1967_v18  ;;  %v861_v18 = vsub.f32 %v697_v53, %v1815_v17 }
  0xe6   :  { %958 = vmatpush.msrb.mxu3 %v1720_v14  ;;  %908 = vmatpush.msrb.mxu2 %v1760_v47 }
  0xe7   :  { %734 = vmatpush.msrb.mxu0 %v1755_v43  ;;  %817 = vmatpush.msrb.mxu1 %v816_v52  ;;  %v1808_v52 = vand.u32 4294901760, %v698_v28  ;;  %v840_v61 = vand.u32 4294901760, %v839_v36  ;;  %v851_v36 = vsub.f32 %v1804_v48, %v850_v11  ;;  %v862_v60 = vand.u32 4294901760, %v861_v18 }
  0xe8   :  { %960 = vmatpush.msrb.mxu3 %v1735_v24  ;;  %911 = vmatpush.msrb.mxu2 %v1767_v54 }
  0xe9   :  { %503 = vmatmul.f32.gmra.mxu2 %v1601_v7  ;;  %531 = vmatmul.f32.vlgmr.msra.gmra.mxu3 %v1589_v56  ;;  %v855_v16 = vsub.f32 %v698_v28, %v1808_v52  ;;  %v852_v3 = vand.u32 4294901760, %v851_v36 }
  0xea   :  { %962 = vmatpush.msrb.mxu3 %v1748_v32  ;;  %736 = vmatpush.msrb.mxu0 %v1769_v59 }
  0xeb   :  { %823 = vmatpush.msrb.mxu1 %v822_v2  ;;  %914 = vmatpush.msrb.mxu2 %v1777_v4  ;;  %v845_v2 = vsub.f32 %v1792_v25, %v1968_v38  ;;  %v856_v38 = vand.u32 4294901760, %v855_v16 }
  0xec   :  { %964 = vmatpush.msrb.mxu3 %v1755_v43  ;;  %738 = vmatpush.msrb.mxu0 %v1779_v10 }
  0xed   :  { %829 = vmatpush.msrb.mxu1 %v828_v27  ;;  %917 = vmatpush.msrb.mxu2 %v1792_v25  ;;  %v846_v27 = vand.u32 4294901760, %v845_v2  ;;  %v857_v28 = vsub.f32 %v855_v16, %v856_v38 }
  0xee   :  { %966 = vmatpush.msrb.mxu3 %v1769_v59  ;;  %740 = vmatpush.msrb.mxu0 %v1794_v26 }
  0xef   :  { %835 = vmatpush.msrb.mxu1 %v834_v35  ;;  %920 = vmatpush.msrb.mxu2 %v1804_v48  ;;  %v863_v35 = vsub.f32 %v861_v18, %v862_v60  ;;  %v858_v48 = vand.u32 4294901760, %v857_v28 }
  0xf0   :  { %968 = vmatpush.msrb.mxu3 %v1779_v10  ;;  %742 = vmatpush.msrb.mxu0 %v1808_v52 }
  0xf1   :  { %507 = vmatmul.f32.gmra.mxu2 %v1617_v23  ;;  %535 = vmatmul.f32.gmra.mxu3 %v1601_v7  ;;  %v864_v53 = vand.u32 4294901760, %v863_v35 }
  0xf2   :  { %970 = vmatpush.msrb.mxu3 %v1794_v26  ;;  %841 = vmatpush.msrb.mxu1 %v840_v61 }
  0xf3   :  { %923 = vmatpush.msrb.mxu2 %v855_v16  ;;  %744 = vmatpush.msrb.mxu0 %v1815_v17 }
  0xf4   :  { %972 = vmatpush.msrb.mxu3 %v1808_v52  ;;  %847 = vmatpush.msrb.mxu1 %v846_v27 }
  0xf5   :  { %926 = vmatpush.msrb.mxu2 %v861_v18  ;;  %997 = vmatpush.msra.mxu0 %v772_v44 }
  0xf6   :  { %974 = vmatpush.msrb.mxu3 %v1815_v17  ;;  %853 = vmatpush.msrb.mxu1 %v852_v3 }
  0xf7   :  { %1001 = vmatpush.msra.mxu0 %v778_v49 }
  0xf8   :  { %859 = vmatpush.msrb.mxu1 %v858_v48 }
  0xf9   :  { %539 = vmatmul.f32.gmra.mxu3 %v1617_v23  ;;  %1005 = vmatpush.msra.mxu0 %v784_v55 }
  0xfa   :  { %865 = vmatpush.msrb.mxu1 %v864_v53 }
  0xfb   :  { %1009 = vmatpush.msra.mxu0 %v790_v62 }
  0xfc   :  { %1072 = vmatpush.msra.mxu1 %v1651_v39  ;;  %v1845_v39 = vld [vmem:[#allocation4] sm:$0xff] }
  0xfd   :  { %1013 = vmatpush.msra.mxu0 %v796_v9 }
  0xfe   :  { %1074 = vmatpush.msra.mxu1 %v1656_v42  ;;  %v298_v42 = vperm.slane %v1845_v39, 0 }
  0xff   :  { %1017 = vmatpush.msra.mxu0 %v802_v12 }
 0x100   :  { %1076 = vmatpush.msra.mxu1 %v1664_v46 }
 0x101   :  { %1021 = vmatpush.msra.mxu0 %v808_v19 }
 0x102   :  { %1078 = vmatpush.msra.mxu1 %v1676_v51 }
 0x103   :  { %1025 = vmatpush.msra.mxu0 %v814_v30 }
 0x104   :  { %1080 = vmatpush.msra.mxu1 %v1690_v58  ;;  %v1974_v58 = vand.u32 4294901760, %v1792_v25 }
 0x105   :  { %1029 = vmatpush.msra.mxu0 %v820_v40 }
 0x106   :  { %1082 = vmatpush.msra.mxu1 %v1697_v63 }
 0x107   :  { %1033 = vmatpush.msra.mxu0 %v1971_v45 }
 0x108   :  { %1084 = vmatpush.msra.mxu1 %v1711_v8 }
 0x109   :  { %1037 = vmatpush.msra.mxu0 %v1972_v50 }
 0x10a   :  { %1086 = vmatpush.msra.mxu1 %v1720_v14 }
 0x10b   :  { %1041 = vmatpush.msra.mxu0 %v1973_v57 }
 0x10c   :  { %1088 = vmatpush.msra.mxu1 %v1735_v24 }
 0x10d   :  { %1045 = vmatpush.msra.mxu0 %v1974_v58 }
 0x10e   :  { %1090 = vmatpush.msra.mxu1 %v1748_v32 }
 0x10f   :  { %1049 = vmatpush.msra.mxu0 %v850_v11 }
 0x110   :  { %1092 = vmatpush.msra.mxu1 %v1755_v43 }
 0x111   :  { %1053 = vmatpush.msra.mxu0 %v856_v38 }
 0x112   :  { %1094 = vmatpush.msra.mxu1 %v1769_v59 }
 0x113   :  { %1057 = vmatpush.msra.mxu0 %v862_v60 }
 0x114   :  { %1096 = vmatpush.msra.mxu1 %v1779_v10 }
 0x116   :  { %1098 = vmatpush.msra.mxu1 %v1794_v26 }
 0x118   :  { %1100 = vmatpush.msra.mxu1 %v1808_v52 }
 0x11a   :  { %1102 = vmatpush.msra.mxu1 %v1815_v17 }
 0x148   :  { %v422_v55 = vpop.f32.mrf.mxu0  ;;  %v458_v63 = vpop.f32.mrf.mxu1 }
 0x14c   :  { %v334_v61 = vpop.f32.mrf.mxu2 }
 0x14d   :  { %v335_v51 = vadd.f32 %v334_v61, %v298_v42 }
 0x150   :  { %v427_v12 = vpop.f32.mrf.mxu0  ;;  %v464_v20 = vpop.f32.mrf.mxu1 }
 0x154   :  { %v342_v41 = vpop.f32.mrf.mxu2  ;;  %v386_v44 = vpop.f32.mrf.mxu3 }
 0x155   :  { %v387_v62 = vadd.f32 %v386_v44, %v335_v51  ;;  %v343_v8 = vadd.f32 %v342_v41, %v298_v42 }
 0x157   :  { %v423_v9 = vadd.f32 %v422_v55, %v387_v62  ;;  %v59_v62 = vld [vmem:[#allocation4 + $0x8] sm:$0xff] }
 0x158   :  { %v432_v60 = vpop.f32.mrf.mxu0  ;;  %v470_v38 = vpop.f32.mrf.mxu1 }
 0x159   :  { %v459_v13 = vadd.f32 %v458_v63, %v423_v9  ;;  %v1874_v9 = vld [vmem:[#allocation4 + $0x18] sm:$0xff] }
 0x15c   :  { %v350_v46 = vpop.f32.mrf.mxu2  ;;  %v390_v49 = vpop.f32.mrf.mxu3 }
 0x15d   :  { %v391_v14 = vadd.f32 %v390_v49, %v343_v8  ;;  %v351_v30 = vadd.f32 %v350_v46, %v298_v42 }
 0x15f   :  { %v428_v31 = vadd.f32 %v427_v12, %v391_v14 }
 0x161   :  { %v465_v47 = vadd.f32 %v464_v20, %v428_v31 }
 0x164   :  { %v394_v1 = vpop.f32.mrf.mxu3  ;;  %v500_v5 = vpop.f32.mrf.mxu2 }
 0x165   :  { %v501_v19 = vadd.f32 %v500_v5, %v459_v13  ;;  %v395_v54 = vadd.f32 %v394_v1, %v351_v30  ;;  %v60_v13 = vld [vmem:[#allocation4 + $0x10] sm:$0xff] }
 0x167   :  { %v433_v18 = vadd.f32 %v432_v60, %v395_v54 }
 0x169   :  { %v471_v17 = vadd.f32 %v470_v38, %v433_v18 }
 0x16c   :  { %v532_v24 = vpop.f32.mrf.mxu3  ;;  %v504_v40 = vpop.f32.mrf.mxu2 }
 0x16d   :  { %v533_v32 = vadd.f32 %v532_v24, %v501_v19  ;;  %v505_v3 = vadd.f32 %v504_v40, %v465_v47 }
 0x16f   :  { %v543_v43 = vmax.f32 %v533_v32, 0.0 }
 0x171   :  { %v745_v59 = vand.u32 4294901760, %v543_v43  ;;  %546 = vadd.xlane.f32.xlu0 %v543_v43 }
 0x173   :  { %v746_v4 = vsub.f32 %v543_v43, %v745_v59  ;;  %867 = vmatmul.f32.vlgmr.msrb.gmra.mxu1 %v745_v59 }
 0x174   :  { %v536_v10 = vpop.f32.mrf.mxu3  ;;  %v508_v11 = vpop.f32.mrf.mxu2 }
 0x175   :  { %v537_v25 = vadd.f32 %v536_v10, %v505_v3  ;;  %929 = vmatmul.f32.vlgmr.msrb.gmra.mxu2 %v746_v4  ;;  %v747_v26 = vand.u32 4294901760, %v746_v4  ;;  %v509_v36 = vadd.f32 %v508_v11, %v471_v17 }
 0x177   :  { %v544_v52 = vmax.f32 %v537_v25, 0.0  ;;  %978 = vmatmul.f32.vlgmr.msrb.gmra.mxu3 %v747_v26  ;;  %v748_v2 = vsub.f32 %v746_v4, %v747_v26 }
 0x179   :  { %v753_v16 = vand.u32 4294901760, %v544_v52  ;;  %548 = vadd.xlane.f32.xlu0 %v544_v52  ;;  %v749_v27 = vand.u32 4294901760, %v748_v2 }
 0x17b   :  { %750 = vmatmul.f32.vlgmr.msrb.gmra.mxu0 %v749_v27  ;;  %871 = vmatmul.f32.gmra.mxu1 %v753_v16  ;;  %v754_v28 = vsub.f32 %v544_v52, %v753_v16 }
 0x17c   :  { %v540_v35 = vpop.f32.mrf.mxu3 }
 0x17d   :  { %v541_v48 = vadd.f32 %v540_v35, %v509_v36  ;;  %934 = vmatmul.f32.gmra.mxu2 %v754_v28  ;;  %v755_v53 = vand.u32 4294901760, %v754_v28 }
 0x17f   :  { %v545_v61 = vmax.f32 %v541_v48, 0.0  ;;  %984 = vmatmul.f32.gmra.mxu3 %v755_v53  ;;  %v756_v41 = vsub.f32 %v754_v28, %v755_v53 }
 0x181   :  { %v761_v44 = vand.u32 4294901760, %v545_v61  ;;  %550 = vadd.xlane.f32.xlu1 %v545_v61  ;;  %v757_v42 = vand.u32 4294901760, %v756_v41 }
 0x183   :  { %758 = vmatmul.f32.gmra.mxu0 %v757_v42  ;;  %875 = vmatmul.f32.gmra.mxu1 %v761_v44  ;;  %v762_v45 = vsub.f32 %v545_v61, %v761_v44 }
 0x185   :  { %939 = vmatmul.f32.gmra.mxu2 %v762_v45  ;;  %v763_v46 = vand.u32 4294901760, %v762_v45 }
 0x187   :  { %990 = vmatmul.f32.gmra.mxu3 %v763_v46  ;;  %v764_v49 = vsub.f32 %v762_v45, %v763_v46  ;;  %v1882_v46 = vld [vmem:[#allocation4 + $0x30] sm:$0x7] }
 0x189   :  { %v765_v50 = vand.u32 4294901760, %v764_v49  ;;  %v1884_v49 = vld [vmem:[#allocation4 + $0x20] sm:$0xff] }
 0x18b   :  { %766 = vmatmul.f32.gmra.mxu0 %v765_v50  ;;  %1104 = vmatmul.f32.vlgmr.msra.gmra.mxu1 %v745_v59 }
 0x193   :  { %1059 = vmatmul.f32.vlgmr.msra.gmra.mxu0 %v745_v59  ;;  %1108 = vmatmul.f32.gmra.mxu1 %v753_v16 }
 0x19b   :  { %1063 = vmatmul.f32.gmra.mxu0 %v753_v16  ;;  %1112 = vmatmul.f32.gmra.mxu1 %v761_v44 }
 0x1a3   :  { %1067 = vmatmul.f32.gmra.mxu0 %v761_v44 }
 0x1e4   :  { %v547_v51 = vpop.xlane.xlu0 %546 }
 0x1e5   :  { %v556_v57 = vrot.slane %v547_v51, 5 }
 0x1e7   :  { %v565_v8 = vmul.f32 %v556_v57, %v1845_v39 }
 0x1e9   :  { %v574_v30 = vrot.slane %v565_v8, 3 }
 0x1ec   :  { %v549_v55 = vpop.xlane.xlu0 %548 }
 0x1ed   :  { %v557_v58 = vrot.slane %v549_v55, 5 }
 0x1ef   :  { %v558_v63 = vsel %vm555_vm2, %v556_v57, %v557_v58 }
 0x1f0   :  { %v868_v1 = vpop.f32.mrf.mxu1  ;;  %v566_v5 = vmul.f32 %v558_v63, %v59_v62 }
 0x1f2   :  { %v575_v19 = vrot.slane %v566_v5, 3 }
 0x1f4   :  { %v551_v12 = vpop.xlane.xlu1 %550  ;;  %v576_v43 = vsel %vm573_vm3, %v574_v30, %v575_v19 }
 0x1f5   :  { %v559_v14 = vrot.slane %v551_v12, 5  ;;  %v585_v3 = vsel %vm584_vm4, %v576_v43, 0.0 }
 0x1f7   :  { %v560_v20 = vsel %vm555_vm2, %v557_v58, %v559_v14  ;;  %v568_v24 = vmul.f32 %v559_v14, %v1874_v9 }
 0x1f8   :  { %v567_v31 = vmul.f32 %v560_v20, %v60_v13  ;;  %v751_v32 = vpop.f32.mrf.mxu0  ;;  %v872_v54 = vpop.f32.mrf.mxu1 }
 0x1f9   :  { %v579_v40 = vrot.slane %v568_v24, 3  ;;  %v930_v17 = vpop.f32.mrf.mxu2  ;;  %v869_v61 = vadd.f32 %v868_v1, %v751_v32 }
 0x1fa   :  { %v577_v47 = vrot.slane %v567_v31, 3  ;;  %v979_v36 = vpop.f32.mrf.mxu3 }
 0x1fb   :  { %v931_v51 = vadd.f32 %v930_v17, %v869_v61 }
 0x1fc   :  { %v578_v59 = vsel %vm573_vm3, %v575_v19, %v577_v47  ;;  %v580_v60 = vsel %vm573_vm3, %v577_v47, %v579_v40  ;;  %v1890_v19 = vld [vmem:[#allocation4 + $0x28] sm:$0xff] }
 0x1fd   :  { %v586_v4 = vsel %vm584_vm4, %v578_v59, 0.0  ;;  %v588_v18 = vsel %vm584_vm4, %v580_v60, 0.0  ;;  %v980_v12 = vadd.f32 %v979_v36, %v931_v51 }
 0x1fe   :  { %v587_v10 = vadd.f32 %v586_v4, %v585_v3 }
 0x200   :  { %v589_v25 = vadd.f32 %v588_v18, %v587_v10  ;;  %v759_v26 = vpop.f32.mrf.mxu0  ;;  %v876_v2 = vpop.f32.mrf.mxu1 }
 0x201   :  { %v873_v41 = vadd.f32 %v872_v54, %v759_v26  ;;  %v935_v44 = vpop.f32.mrf.mxu2 }
 0x202   :  { %v590_v38 = vrot.slane %v589_v25, 4  ;;  %v985_v57 = vpop.f32.mrf.mxu3 }
 0x203   :  { %v936_v55 = vadd.f32 %v935_v44, %v873_v41 }
 0x204   :  { %v591_v52 = vadd.f32 %v590_v38, %v589_v25 }
 0x205   :  { %v986_v13 = vadd.f32 %v985_v57, %v936_v55 }
 0x206   :  { %v592_v11 = vrot.slane %v591_v52, 2 }
 0x208   :  { %v593_v16 = vadd.f32 %v592_v11, %v591_v52  ;;  %v767_v27 = vpop.f32.mrf.mxu0  ;;  %v1105_v48 = vpop.f32.mrf.mxu1 }
 0x209   :  { %v877_v14 = vadd.f32 %v876_v2, %v767_v27  ;;  %v940_v32 = vpop.f32.mrf.mxu2 }
 0x20a   :  { %v594_v28 = vrot.slane %v593_v16, 1  ;;  %v991_v59 = vpop.f32.mrf.mxu3 }
 0x20b   :  { %v941_v43 = vadd.f32 %v940_v32, %v877_v14 }
 0x20c   :  { %v595_v35 = vadd.f32 %v594_v28, %v593_v16 }
 0x20d   :  { %v992_v3 = vadd.f32 %v991_v59, %v941_v43 }
 0x20e   :  { %v596_v53 = vadd.f32 %v595_v35, %v1845_v39 }
 0x210   :  { %v1060_v42 = vpop.f32.mrf.mxu0  ;;  %v597_v45 = vmax.f32 %v596_v53, 0.0  ;;  %v1109_v20 = vpop.f32.mrf.mxu1 }
 0x211   :  { %v1061_v30 = vadd.f32 %v1060_v42, %v980_v12 }
 0x212   :  { %v598_v50 = vperm.slane %v597_v45, 2 }
 0x213   :  { %v1106_v54 = vadd.f32 %v1105_v48, %v1061_v30 }
 0x214   :  { %v602_v58 = vmul.f32 %v598_v50, %v1882_v46  ;;  %v600_v62 = vmul.f32 %v598_v50, %v1884_v49  ;;  %v599_v63 = vmul.f32 %v598_v50, %v1874_v9  ;;  %v601_v40 = vmul.f32 %v598_v50, %v1890_v19 }
 0x215   :  { %v1134_v18 = vand.u32 4294901760, %v1106_v54 }
 0x216   :  { %v614_v1 = vsel %vm613_vm5, %v602_v58, 0.0  ;;  %v607_v5 = vsel %vm584_vm4, %v600_v62, 0.0  ;;  %v604_v8 = vsel %vm603_vm6, %v599_v63, 0.0  ;;  %v610_v60 = vsel %vm584_vm4, %v601_v40, 0.0 }
 0x217   :  { %615 = vadd.xlane.f32.xlu0 %v614_v1  ;;  %608 = vadd.xlane.f32.xlu2 %v607_v5  ;;  %v1187_v2 = vsub.f32 %v1106_v54, %v1134_v18 }
 0x218   :  { %605 = vadd.xlane.f32.xlu1 %v604_v8  ;;  %v1064_v24 = vpop.f32.mrf.mxu0  ;;  %v1113_v26 = vpop.f32.mrf.mxu1 }
 0x219   :  { %v1065_v31 = vadd.f32 %v1064_v24, %v986_v13  ;;  %v1188_v36 = vand.u32 4294901760, %v1187_v2 }
 0x21b   :  { %v1110_v47 = vadd.f32 %v1109_v20, %v1065_v31  ;;  %v1189_v53 = vsub.f32 %v1187_v2, %v1188_v36 }
 0x21d   :  { %v1132_v4 = vand.u32 4294901760, %v1110_v47  ;;  %v1190_v41 = vand.u32 4294901760, %v1189_v53 }
 0x21f   :  { %611 = vadd.xlane.f32.xlu2 %v610_v60  ;;  %v1181_v38 = vsub.f32 %v1110_v47, %v1132_v4 }
 0x220   :  { %v1068_v10 = vpop.f32.mrf.mxu0 }
 0x221   :  { %v1069_v25 = vadd.f32 %v1068_v10, %v992_v3  ;;  %v1182_v16 = vand.u32 4294901760, %v1181_v38 }
 0x223   :  { %v1114_v52 = vadd.f32 %v1113_v26, %v1069_v25  ;;  %v1183_v35 = vsub.f32 %v1181_v38, %v1182_v16 }
 0x225   :  { %v1130_v11 = vand.u32 4294901760, %v1114_v52  ;;  %v1184_v61 = vand.u32 4294901760, %v1183_v35 }
 0x227   :  { %v1175_v17 = vsub.f32 %v1114_v52, %v1130_v11  ;;  %1131 = vmatpush.msra.mxu2 %v1130_v11  ;;  %1333 = vmatpush.msrb.mxu1 %v1130_v11 }
 0x229   :  { %1133 = vmatpush.msra.mxu2 %v1132_v4  ;;  %1335 = vmatpush.msrb.mxu1 %v1132_v4  ;;  %v1176_v27 = vand.u32 4294901760, %v1175_v17 }
 0x22b   :  { %1135 = vmatpush.msra.mxu2 %v1134_v18  ;;  %1297 = vmatpush.msrb.mxu0 %v1176_v27  ;;  %v1177_v28 = vsub.f32 %v1175_v17, %v1176_v27 }
 0x22c   :  { %1337 = vmatpush.msrb.mxu1 %v1134_v18  ;;  %1141 = vmatmul.f32.vlgmr.msra.gmra.mxu2 %v1612_v21 }
 0x22d   :  { %1220 = vmatpush.msrb.mxu2 %v1175_v17  ;;  %1301 = vmatpush.msrb.mxu0 %v1182_v16  ;;  %v1178_v48 = vand.u32 4294901760, %v1177_v28 }
 0x22e   :  { %1339 = vmatmul.f32.vlgmr.msrb.gmra.mxu1 %v1589_v56 }
 0x22f   :  { %1223 = vmatpush.msrb.mxu2 %v1181_v38  ;;  %1179 = vmatpush.msra.mxu3 %v1178_v48 }
 0x230   :  { %1305 = vmatpush.msrb.mxu0 %v1188_v36 }
 0x231   :  { %1226 = vmatpush.msrb.mxu2 %v1187_v2  ;;  %1307 = vmatmul.f32.vlgmr.msrb.gmra.mxu0 %v1589_v56 }
 0x232   :  { %1185 = vmatpush.msra.mxu3 %v1184_v61 }
 0x234   :  { %1191 = vmatpush.msra.mxu3 %v1190_v41  ;;  %1149 = vmatmul.f32.gmra.mxu2 %v1627_v33 }
 0x235   :  { %1193 = vmatmul.f32.vlgmr.msra.gmra.mxu3 %v1589_v56 }
 0x236   :  { %1257 = vmatpush.msrb.mxu3 %v1130_v11  ;;  %1343 = vmatmul.f32.gmra.mxu1 %v1601_v7 }
 0x238   :  { %1259 = vmatpush.msrb.mxu3 %v1132_v4 }
 0x239   :  { %1311 = vmatmul.f32.gmra.mxu0 %v1601_v7 }
 0x23a   :  { %1261 = vmatpush.msrb.mxu3 %v1134_v18 }
 0x23c   :  { %1157 = vmatmul.f32.gmra.mxu2 %v1638_v37 }
 0x23d   :  { %1197 = vmatmul.f32.gmra.mxu3 %v1601_v7 }
 0x23e   :  { %1347 = vmatmul.f32.gmra.mxu1 %v1617_v23 }
 0x241   :  { %1315 = vmatmul.f32.gmra.mxu0 %v1617_v23 }
 0x244   :  { %1229 = vmatmul.f32.vlgmr.msrb.gmra.mxu2 %v1595_v0 }
 0x245   :  { %1201 = vmatmul.f32.gmra.mxu3 %v1617_v23  ;;  %v1116_v23 = vperm.slane %v1845_v39, 1 }
 0x24c   :  { %1234 = vmatmul.f32.gmra.mxu2 %v1609_v15  ;;  %v1530_v15 = vmov 8  }
 0x24d   :  { %1265 = vmatmul.f32.vlgmr.msrb.gmra.mxu3 %v1599_v6  ;;  %1444 = vset.pattern.permute.xlu2 %v1530_v15 }
 0x24e   :  { %1443 = vset.pattern.permute.xlu1 %v1530_v15  ;;  %1445 = vset.pattern.permute.xlu0 %v1530_v15 }
 0x254   :  { %1239 = vmatmul.f32.gmra.mxu2 %v1623_v29 }
 0x255   :  { %1271 = vmatmul.f32.gmra.mxu3 %v1615_v22 }
 0x25d   :  { %1277 = vmatmul.f32.gmra.mxu3 %v1630_v34  ;;  %v1351_v34 = vlaneseq }
 0x25f   :  { %v1914_v58 = vand.u32 127, %v1351_v34 }
 0x261   :  { %vm1353_vm7 = vcmp.lt.s32.totalorder %v1914_v58, 8 }
 0x28a   :  { %v609_v44 = vpop.xlane.xlu2 %608  ;;  %v616_v41 = vpop.xlane.xlu0 %615 }
 0x28b   :  { %v618_v0 = vadd.f32 %v609_v44, %v1884_v49  ;;  %v606_v53 = vpop.xlane.xlu1 %605 }
 0x28c   :  { %v617_v61 = vadd.f32 %v606_v53, %v1874_v9 }
 0x28d   :  { %v1435_v22 = vmul.f32 -1.442695, %v618_v0 }
 0x28f   :  { %1446 = vpow2.f32 %v1435_v22 }
 0x295   :  { %v1447_v1 = vpop.eup %1446 }
 0x296   :  { %v634_v13 = vadd.f32 1.0, %v1447_v1 }
 0x298   :  { %1448 = vrcp.f32 %v634_v13  ;;  %v663_v27 = vand.u32 2147483648, %v634_v13  ;;  %vm657_vm9 = vweird.f32 %v634_v13  ;;  %v661_v36 = vand.u32 2147483647, %v634_v13 }
 0x29a   :  { %v664_v35 = vor.u32 1.1754944e-38, %v663_v27  ;;  %vm662_vm11 = vcmp.eq.f32.partialorder %v661_v36, 8.507059e+37 }
 0x29e   :  { %v1449_v10 = vpop.eup %1448 }
 0x29f   :  { %v653_v38 = vmul.f32 %v1449_v10, %v634_v13  ;;  %vm658_vm8 = vweird.f32 %v1449_v10 }
 0x2a0   :  { %vm659_vm10 = vmor %vm657_vm9, %vm658_vm8  ;;  %vm1387_vm9 = vcmp.eq.s32.totalorder %v1914_v58, 8 }
 0x2a1   :  { %v654_v11 = vsub.f32 1.0, %v653_v38 }
 0x2a3   :  { %v655_v17 = vmul.f32 %v1449_v10, %v654_v11 }
 0x2a5   :  { %v656_v16 = vadd.f32 %v1449_v10, %v655_v17 }
 0x2a7   :  { %v660_v28 = vsel %vm659_vm10, %v1449_v10, %v656_v16 }
 0x2a8   :  { %v665_v48 = vsel %vm662_vm11, %v664_v35, %v660_v28 }
 0x2ab   :  { %v1340_v51 = vpop.f32.mrf.mxu1 }
 0x2ae   :  { %v1308_v29 = vpop.f32.mrf.mxu0 }
 0x2af   :  { %v1142_v56 = vpop.f32.mrf.mxu2 }
 0x2b0   :  { %v1143_v6 = vadd.f32 %v1142_v56, %v1116_v23  ;;  %v1434_v56 = vmul.f32 -1.442695, %v617_v61 }
 0x2b2   :  { %1450 = vpow2.f32 %v1434_v56 }
 0x2b3   :  { %v1344_v30 = vpop.f32.mrf.mxu1 }
 0x2b6   :  { %v1312_v12 = vpop.f32.mrf.mxu0 }
 0x2b7   :  { %v1150_v21 = vpop.f32.mrf.mxu2 }
 0x2b8   :  { %v1194_v7 = vpop.f32.mrf.mxu3  ;;  %v1151_v39 = vadd.f32 %v1150_v21, %v1116_v23  ;;  %v612_v21 = vpop.xlane.xlu2 %611 }
 0x2b9   :  { %v1195_v50 = vadd.f32 %v1194_v7, %v1143_v6  ;;  %v620_v7 = vadd.f32 %v616_v41, %v1882_v46 }
 0x2bb   :  { %v1348_v25 = vpop.f32.mrf.mxu1 }
 0x2be   :  { %v1316_v4 = vpop.f32.mrf.mxu0 }
 0x2bf   :  { %v1158_v37 = vpop.f32.mrf.mxu2 }
 0x2c0   :  { %v1198_v33 = vpop.f32.mrf.mxu3  ;;  %v1159_v31 = vadd.f32 %v1158_v37, %v1116_v23  ;;  %v619_v37 = vadd.f32 %v612_v21, %v1890_v19  ;;  %v1451_v23 = vpop.eup %1450 }
 0x2c1   :  { %v1199_v5 = vadd.f32 %v1198_v33, %v1151_v39  ;;  %v1437_v33 = vmul.f32 -1.442695, %v620_v7 }
 0x2c3   :  { %1452 = vpow2.f32 %v1437_v33 }
 0x2c7   :  { %v1230_v45 = vpop.f32.mrf.mxu2 }
 0x2c8   :  { %v1202_v42 = vpop.f32.mrf.mxu3  ;;  %v1231_v55 = vadd.f32 %v1230_v45, %v1195_v50  ;;  %v633_v45 = vadd.f32 1.0, %v1451_v23 }
 0x2c9   :  { %v1203_v47 = vadd.f32 %v1202_v42, %v1159_v31  ;;  %v1436_v42 = vmul.f32 -1.442695, %v619_v37  ;;  %v1453_v9 = vpop.eup %1452 }
 0x2ca   :  { %vm642_vm13 = vweird.f32 %v633_v45  ;;  %v646_v31 = vand.u32 2147483647, %v633_v45 }
 0x2cc   :  { %vm647_vm15 = vcmp.eq.f32.partialorder %v646_v31, 8.507059e+37 }
 0x2cf   :  { %v1235_v49 = vpop.f32.mrf.mxu2 }
 0x2d0   :  { %v1266_v57 = vpop.f32.mrf.mxu3  ;;  %v1236_v14 = vadd.f32 %v1235_v49, %v1199_v5 }
 0x2d1   :  { %v1267_v62 = vadd.f32 %v1266_v57, %v1231_v55 }
 0x2d3   :  { %v1309_v63 = vadd.f32 %v1308_v29, %v1267_v62  ;;  %v636_v29 = vadd.f32 1.0, %v1453_v9 }
 0x2d5   :  { %v1341_v8 = vadd.f32 %v1340_v51, %v1309_v63  ;;  %vm687_vm1 = vweird.f32 %v636_v29 }
 0x2d7   :  { %v1354_v20 = vsel %vm1353_vm7, %v1341_v8, -1e+30  ;;  %v1240_v43 = vpop.f32.mrf.mxu2 }
 0x2d8   :  { %v1272_v24 = vpop.f32.mrf.mxu3  ;;  %1357 = vmax.xlane.f32.xlu1 %v1354_v20  ;;  %v1241_v59 = vadd.f32 %v1240_v43, %v1203_v47 }
 0x2d9   :  { %v1273_v32 = vadd.f32 %v1272_v24, %v1236_v14 }
 0x2db   :  { %v1313_v40 = vadd.f32 %v1312_v12, %v1273_v32 }
 0x2dd   :  { %v1345_v54 = vadd.f32 %v1344_v30, %v1313_v40  ;;  %v648_v30 = vand.u32 2147483648, %v633_v45 }
 0x2df   :  { %v1355_v60 = vsel %vm1353_vm7, %v1345_v54, -1e+30  ;;  %v649_v47 = vor.u32 1.1754944e-38, %v648_v30 }
 0x2e0   :  { %v1278_v3 = vpop.f32.mrf.mxu3  ;;  %1359 = vmax.xlane.f32.xlu2 %v1355_v60 }
 0x2e1   :  { %v1279_v18 = vadd.f32 %v1278_v3, %v1241_v59  ;;  %v693_v3 = vand.u32 2147483648, %v636_v29 }
 0x2e3   :  { %v1317_v26 = vadd.f32 %v1316_v4, %v1279_v18  ;;  %v691_v4 = vand.u32 2147483647, %v636_v29 }
 0x2e5   :  { %v1349_v52 = vadd.f32 %v1348_v25, %v1317_v26  ;;  %v694_v25 = vor.u32 1.1754944e-38, %v693_v3  ;;  %vm692_vm5 = vcmp.eq.f32.partialorder %v691_v4, 8.507059e+37 }
 0x2e7   :  { %v1356_v2 = vsel %vm1353_vm7, %v1349_v52, -1e+30 }
 0x2e8   :  { %1361 = vmax.xlane.f32.xlu0 %v1356_v2 }
 0x2f8   :  { %1395 = vperm.xlu2 %1444, %v665_v48  }
 0x34b   :  { %v1358_v44 = vpop.xlane.xlu1 %1357 }
 0x34c   :  { %v1926_v0 = vsub.f32 %v1354_v20, %v1358_v44 }
 0x34e   :  { %v1366_v6 = vmul.f32 1.442695, %v1926_v0 }
 0x350   :  { %1454 = vpow2.f32 %v1366_v6 }
 0x351   :  { %1456 = vpow2.f32 %v1436_v42 }
 0x352   :  { %1458 = vrcp.f32 %v633_v45 }
 0x353   :  { %v1360_v15 = vpop.xlane.xlu2 %1359 }
 0x354   :  { %v1929_v46 = vsub.f32 %v1355_v60, %v1360_v15 }
 0x356   :  { %v1455_v22 = vpop.eup %1454  ;;  %v1368_v19 = vmul.f32 1.442695, %v1929_v46 }
 0x357   :  { %v1457_v34 = vpop.eup %1456  ;;  %1372 = vadd.xlane.f32.xlu1 %v1455_v22 }
 0x358   :  { %1460 = vpow2.f32 %v1368_v19  ;;  %v1459_v50 = vpop.eup %1458  ;;  %v635_v51 = vadd.f32 1.0, %v1457_v34 }
 0x359   :  { %1462 = vrcp.f32 %v636_v29  ;;  %v638_v39 = vmul.f32 %v1459_v50, %v633_v45  ;;  %vm643_vm12 = vweird.f32 %v1459_v50 }
 0x35a   :  { %1464 = vrcp.f32 %v635_v51  ;;  %vm644_vm14 = vmor %vm642_vm13, %vm643_vm12  ;;  %v678_v26 = vand.u32 2147483648, %v635_v51  ;;  %vm672_vm6 = vweird.f32 %v635_v51  ;;  %v676_v38 = vand.u32 2147483647, %v635_v51 }
 0x35b   :  { %v1362_v55 = vpop.xlane.xlu0 %1361  ;;  %v639_v1 = vsub.f32 1.0, %v638_v39  ;;  %v1396_v16 = vpop.permute.xlu2 %1395 }
 0x35c   :  { %v1932_v57 = vsub.f32 %v1356_v2, %v1362_v55  ;;  %v679_v11 = vor.u32 1.1754944e-38, %v678_v26  ;;  %vm677_vm8 = vcmp.eq.f32.partialorder %v676_v38, 8.507059e+37 }
 0x35d   :  { %v640_v12 = vmul.f32 %v1459_v50, %v639_v1 }
 0x35e   :  { %v1461_v62 = vpop.eup %1460  ;;  %v1370_v49 = vmul.f32 1.442695, %v1932_v57 }
 0x35f   :  { %1374 = vadd.xlane.f32.xlu2 %v1461_v62  ;;  %v1463_v63 = vpop.eup %1462  ;;  %v641_v24 = vadd.f32 %v1459_v50, %v640_v12 }
 0x360   :  { %1466 = vpow2.f32 %v1370_v49  ;;  %v683_v5 = vmul.f32 %v1463_v63, %v636_v29  ;;  %v1465_v8 = vpop.eup %1464  ;;  %vm688_vm0 = vweird.f32 %v1463_v63 }
 0x361   :  { %v668_v20 = vmul.f32 %v1465_v8, %v635_v51  ;;  %v645_v43 = vsel %vm644_vm14, %v1459_v50, %v641_v24  ;;  %vm689_vm3 = vmor %vm687_vm1, %vm688_vm0  ;;  %vm673_vm4 = vweird.f32 %v1465_v8 }
 0x362   :  { %v684_v14 = vsub.f32 1.0, %v683_v5  ;;  %v650_v54 = vsel %vm647_vm15, %v649_v47, %v645_v43  ;;  %vm674_vm7 = vmor %vm672_vm6, %vm673_vm4 }
 0x363   :  { %v669_v40 = vsub.f32 1.0, %v668_v20 }
 0x364   :  { %v685_v32 = vmul.f32 %v1463_v63, %v684_v14 }
 0x365   :  { %v670_v60 = vmul.f32 %v1465_v8, %v669_v40 }
 0x366   :  { %v1467_v13 = vpop.eup %1466  ;;  %v686_v59 = vadd.f32 %v1463_v63, %v685_v32 }
 0x367   :  { %1376 = vadd.xlane.f32.xlu0 %v1467_v13  ;;  %v671_v18 = vadd.f32 %v1465_v8, %v670_v60 }
 0x368   :  { %v690_v10 = vsel %vm689_vm3, %v1463_v63, %v686_v59 }
 0x369   :  { %v695_v52 = vsel %vm692_vm5, %v694_v25, %v690_v10  ;;  %v675_v2 = vsel %vm674_vm7, %v1465_v8, %v671_v18 }
 0x36a   :  { %v680_v17 = vsel %vm677_vm8, %v679_v11, %v675_v2 }
 0x370   :  { %1390 = vperm.xlu1 %1443, %v650_v54  }
 0x377   :  { %1405 = vperm.xlu2 %1444, %v695_v52  }
 0x37b   :  { %1400 = vperm.xlu0 %1445, %v680_v17  }
 0x3ca   :  { %v1373_v27 = vpop.xlane.xlu1 %1372 }
 0x3cb   :  { %1468 = vlog2.f32 %v1373_v27 }
 0x3d1   :  { %v1469_v28 = vpop.eup %1468 }
 0x3d2   :  { %v1375_v36 = vpop.xlane.xlu2 %1374  ;;  %v1379_v35 = vmul.f32 0.6931472, %v1469_v28 }
 0x3d3   :  { %1470 = vlog2.f32 %v1375_v36 }
 0x3d4   :  { %v1384_v53 = vsub.f32 %v1926_v0, %v1379_v35 }
 0x3d6   :  { %v1411_v7 = vrot.slane %v1384_v53, 5 }
 0x3d9   :  { %v1471_v48 = vpop.eup %1470 }
 0x3da   :  { %v1381_v61 = vmul.f32 0.6931472, %v1471_v48  ;;  %v1377_v41 = vpop.xlane.xlu0 %1376  ;;  %v1406_v9 = vpop.permute.xlu2 %1405 }
 0x3db   :  { %1472 = vlog2.f32 %v1377_v41 }
 0x3dc   :  { %v1385_v56 = vsub.f32 %v1929_v46, %v1381_v61 }
 0x3de   :  { %v1412_v21 = vrot.slane %v1385_v56, 5 }
 0x3e0   :  { %v1413_v33 = vsel %vm555_vm2, %v1411_v7, %v1412_v21 }
 0x3e1   :  { %v1473_v37 = vpop.eup %1472  ;;  %v1421_v44 = vsel %vm1387_vm9, %v1396_v16, %v1413_v33 }
 0x3e2   :  { %v1383_v23 = vmul.f32 0.6931472, %v1473_v37  ;;  %1425 = vst [vmem:[%s1966_s5 + $0x5] sm:$0xff] %v1421_v44  ;;  %v1391_v0 = vpop.permute.xlu1 %1390 }
 0x3e3   :  { %v1420_v42 = vsel %vm1387_vm9, %v1391_v0, %v1411_v7 }
 0x3e4   :  { %v1386_v6 = vsub.f32 %v1932_v57, %v1383_v23  ;;  %1424 = vst [vmem:[%s1966_s5 - $0x3] sm:$0xf8] %v1420_v42 }
 0x3e6   :  { %v1414_v45 = vrot.slane %v1386_v6, 5 }
 0x3e8   :  { %v1423_v15 = vsel %vm1387_vm9, %v1406_v9, %v1414_v45  ;;  %v1415_v22 = vsel %vm555_vm2, %v1412_v21, %v1414_v45 }
 0x3e9   :  { %1427 = vst [vmem:[%s1966_s5 + $0x15] sm:$0x7] %v1423_v15 }
 0x3ed   :  { %v1401_v46 = vpop.permute.xlu0 %1400 }
 0x3ee   :  { %v1422_v29 = vsel %vm1387_vm9, %v1401_v46, %v1415_v22 }
 0x3ef   :  { %1426 = vst [vmem:[%s1966_s5 + $0xd] sm:$0xff] %v1422_v29 }
 0x3f0   :  { %1432 = vsyncpa [#allocation3], 1 }
 0x3f1   :  { %1433 = vsyncpa [#allocation5], 1 }

</bundles_post_ra>
